<compile_context>
chip_gen: v6e
topology: v6e:2x2x1
jax: 0.10.0
libtpu: 0.0.40
codegen_flags: <defaults>
</compile_context>

<pallas_src>
import functools

import jax
import jax.numpy as jnp
from jax.experimental import pallas as pl
from jax.experimental.pallas import tpu as pltpu


def _round_up(v, m):
    return ((v + m - 1) // m) * m


def _pool_kernel(batch_ref, x_ref, out_ref, acc_ref, cnt_ref, *,
                 readout, n_nodes, tile_n):
    """Streaming segment reduction over node tiles.

    grid = (F tiles [parallel], node tiles [arbitrary / reduction]).
    acc_ref: [G_pad, tile_f] f32 accumulator, resident across the node axis.
    cnt_ref: [G_pad, 1]      f32 per-graph node counts (mean + empty-graph test for max).
    """
    ni = pl.program_id(1)
    nn = pl.num_programs(1)
    g_pad = acc_ref.shape[0]
    ragged = (n_nodes % tile_n) != 0          # static: last node tile has garbage rows
    start = ni * tile_n

    @pl.when(ni == 0)
    def _init():
        if readout == "max":
            acc_ref[...] = jnp.full(acc_ref.shape, -jnp.inf, acc_ref.dtype)
        else:
            acc_ref[...] = jnp.zeros(acc_ref.shape, acc_ref.dtype)
        if readout in ("mean", "max"):
            cnt_ref[...] = jnp.zeros(cnt_ref.shape, cnt_ref.dtype)

    x = x_ref[...]                             # [tile_n, tile_f]

    if readout == "max":
        b_col = batch_ref[...]                 # [tile_n, 1] int32 (sublane layout)
        xf = x.astype(jnp.float32)
        if ragged:
            row_iota = jax.lax.broadcasted_iota(jnp.int32, b_col.shape, 0)
            valid = (start + row_iota) < n_nodes           # [tile_n, 1]
            b_lo = jnp.where(valid, b_col, g_pad)
            b_hi = jnp.where(valid, b_col, -1)
        else:
            valid = None
            b_lo = b_col
            b_hi = b_col
        # Range-bounded graph loop: for sorted PyG batches this is 1-3 iterations.
        g_lo = jnp.maximum(jnp.min(b_lo), 0)
        g_hi = jnp.minimum(jnp.max(b_hi), g_pad - 1)

        def body(g, carry):
            mask = b_col == g
            if ragged:
                mask = jnp.logical_and(mask, valid)
            m = jnp.max(jnp.where(mask, xf, -jnp.inf), axis=0, keepdims=True)  # [1, tile_f]
            # Dynamic-row RMW on the resident accumulator (no full-acc select / carry).
            acc_ref[pl.ds(g, 1), :] = jnp.maximum(acc_ref[pl.ds(g, 1), :], m)
            cnt_ref[pl.ds(g, 1), :] = cnt_ref[pl.ds(g, 1), :] + jnp.sum(
                mask.astype(jnp.float32), axis=0, keepdims=True)
            return carry

        jax.lax.fori_loop(g_lo, g_hi + 1, body, 0)
    else:
        # Segment-sum as one-hot^T @ x on the MXU, f32 accumulation.
        # (For f32 activations this is the multi-pass MXU path; keep activations
        #  bf16 upstream if the vmatmul slot binds — the one-hot is exact in bf16.)
        b_row = batch_ref[...]                 # [1, tile_n] int32 (lane-major layout)
        gids = jax.lax.broadcasted_iota(jnp.int32, (g_pad, b_row.shape[1]), 0)
        sel = gids == b_row                    # [g_pad, tile_n]
        if ragged:
            col_iota = jax.lax.broadcasted_iota(jnp.int32, b_row.shape, 1)
            lane_valid = (start + col_iota) < n_nodes       # [1, tile_n]
            sel = jnp.logical_and(sel, lane_valid)
            # Zero garbage rows of x so stray NaN/Inf can't poison the matmul (0*NaN=NaN).
            row_iota = jax.lax.broadcasted_iota(jnp.int32, (x.shape[0], 1), 0)
            row_valid = (start + row_iota) < n_nodes        # [tile_n, 1]
            x = jnp.where(row_valid, x, jnp.zeros_like(x))
        one_hot_t = sel.astype(x.dtype)
        acc_ref[...] += jnp.dot(one_hot_t, x, preferred_element_type=jnp.float32)
        if readout == "mean":
            cnt_ref[...] += jnp.sum(sel.astype(jnp.float32), axis=1, keepdims=True)

    @pl.when(ni == nn - 1)
    def _finalize():
        acc = acc_ref[...]
        if readout == "mean":
            acc = acc / jnp.maximum(cnt_ref[...], 1.0)      # scatter_mean clamps count >= 1
        elif readout == "max":
            acc = jnp.where(cnt_ref[...] > 0.0, acc, 0.0)   # empty segment -> 0 (count-based)
        out_ref[...] = acc.astype(out_ref.dtype)


def gnn_pool(x, batch, num_graphs, readout="mean", *, tile_n=None, tile_f=None):
    """Forward pass of GNNPool(readout)(x, batch).

    x:     [N, F] node features (floating dtype)
    batch: [N]    int graph ids in [0, num_graphs)
    """
    readout = readout.lower()
    if readout == "identity":
        # identity readout: forward returns x unchanged, nothing to put in a kernel.
        return x
    if readout not in ("mean", "sum", "max"):
        raise ValueError(f"unsupported readout: {readout}")

    n, f = x.shape
    num_graphs = int(num_graphs)
    g_pad = _round_up(max(num_graphs, 1), 8)              # sublane-aligned accumulator rows
    itemsize = jnp.dtype(x.dtype).itemsize

    # ---- tile_f: multiple-of-128 divisor of F (>= 2 tiles when F >= 256 so the
    # "parallel" F axis can shard across v7x's two TensorCores); for ragged F use a
    # single full-F block (block dim equal to the full array dim is legal). ----
    if tile_f is None:
        if f % 128 == 0:
            target = max(128, min(1024, f // 2 if f >= 256 else f))
            tile_f = 128
            d = 128
            while d <= target:
                if f % d == 0:
                    tile_f = d
                d += 128
        else:
            tile_f = f
    num_f_tiles = -(-f // tile_f)

    # ---- tile_n: node streaming tile, multiple of 128 (lane-major batch ids)
    # unless it covers all nodes. Cap the x block at ~8 MiB so the double-buffered
    # stream + accumulator fits v7x's smaller VMEM comfortably. ----
    if tile_n is None:
        max_blk_bytes = 8 * 1024 * 1024
        tn = max_blk_bytes // max(1, tile_f * itemsize)
        tile_n = max(128, min(4096, tn)) // 128 * 128
    if tile_n >= n:
        tile_n = n                                          # single node step, full-N block
    else:
        tile_n = max(128, (tile_n // 128) * 128)
    num_n_tiles = -(-n // tile_n)

    # Batch ids: no padding, just a free reshape into the layout each path wants.
    b32 = batch.astype(jnp.int32)
    if readout == "max":
        b_arr = b32.reshape(n, 1)                           # sublane-major for row masking
        b_spec = pl.BlockSpec((tile_n, 1), lambda j, i: (i, 0))
    else:
        b_arr = b32.reshape(1, n)                           # lane-major for the one-hot compare
        b_spec = pl.BlockSpec((1, tile_n), lambda j, i: (0, i))

    f_out = num_f_tiles * tile_f                            # == f for the auto-chosen tile_f

    kernel = functools.partial(_pool_kernel, readout=readout, n_nodes=n, tile_n=tile_n)

    # VMEM budget: double-buffered x blocks + accumulator + out block, with headroom.
    blk_bytes = tile_n * tile_f * itemsize
    acc_bytes = g_pad * tile_f * 4
    out_bytes = g_pad * tile_f * itemsize
    vmem_limit = int(min(64 * 1024 * 1024,
                         max(32 * 1024 * 1024,
                             3 * blk_bytes + 2 * acc_bytes + 2 * out_bytes + (4 << 20))))

    out_p = pl.pallas_call(
        kernel,
        out_shape=jax.ShapeDtypeStruct((g_pad, f_out), x.dtype),
        grid_spec=pltpu.PrefetchScalarGridSpec(
            num_scalar_prefetch=0,
            grid=(num_f_tiles, num_n_tiles),
            in_specs=[
                b_spec,
                pl.BlockSpec((tile_n, tile_f), lambda j, i: (i, j)),
            ],
            out_specs=pl.BlockSpec((g_pad, tile_f), lambda j, i: (0, j)),
            scratch_shapes=[
                pltpu.VMEM((g_pad, tile_f), jnp.float32),   # segment accumulator
                pltpu.VMEM((g_pad, 1), jnp.float32),        # per-graph counts (mean/max)
            ],
        ),
        compiler_params=pltpu.CompilerParams(
            dimension_semantics=("parallel", "arbitrary"),
            vmem_limit_bytes=vmem_limit,
        ),
    )(b_arr, x)

    return out_p[:num_graphs, :f]


def _reference(x, batch, num_graphs, readout):
    """Pure-JAX reference mirroring PyG global_{mean,add,max}_pool / identity."""
    if readout == "identity":
        return x
    ssum = jax.ops.segment_sum(x, batch, num_segments=num_graphs)
    cnt = jax.ops.segment_sum(jnp.ones((x.shape[0],), jnp.float32), batch,
                              num_segments=num_graphs)
    if readout == "sum":
        return ssum
    if readout == "mean":
        return ssum / jnp.maximum(cnt, 1.0)[:, None]
    if readout == "max":
        smax = jax.ops.segment_max(x, batch, num_segments=num_graphs)
        return jnp.where((cnt > 0)[:, None], smax, 0.0)
    raise ValueError(readout)


if __name__ == "__main__":
    key = jax.random.PRNGKey(0)
    k1, k2, k3, k4, k5 = jax.random.split(key, 5)
    failures = []

    # Case 1: small sorted graph batch (2 graphs, 8 nodes, hidden dim 32).
    x1 = jax.random.normal(k1, (8, 32), dtype=jnp.float32)
    b1 = jnp.array([0, 0, 0, 0, 1, 1, 1, 1], dtype=jnp.int32)
    for r in ("mean", "sum", "max", "identity"):
        out = jax.block_until_ready(gnn_pool(x1, b1, 2, readout=r))
        ref = _reference(x1, b1, 2, r)
        if not jnp.allclose(out, ref, atol=1e-5, rtol=1e-5):
            failures.append(f"case1/{r}")

    # Case 2: unsorted, ragged dims, one empty graph (n=37, f=33, g=5).
    x2 = jax.random.normal(k2, (37, 33), dtype=jnp.float32)
    b2 = jax.random.randint(k3, (37,), 0, 4, dtype=jnp.int32)          # graph 4 empty
    for r in ("mean", "sum", "max"):
        out = jax.block_until_ready(gnn_pool(x2, b2, 5, readout=r))
        ref = _reference(x2, b2, 5, r)
        if not jnp.allclose(out, ref, atol=1e-4, rtol=1e-4):
            failures.append(f"case2/{r}")

    # Case 3: multi node tile + ragged node tail + 2 parallel F tiles (forced tile_n).
    x3 = jax.random.normal(k4, (300, 256), dtype=jnp.float32)
    b3 = jnp.sort(jax.random.randint(k5, (300,), 0, 9, dtype=jnp.int32))  # graph 9 empty
    for r in ("mean", "sum", "max"):
        out = jax.block_until_ready(gnn_pool(x3, b3, 10, readout=r, tile_n=128))
        ref = _reference(x3, b3, 10, r)
        if not jnp.allclose(out, ref, atol=1e-4, rtol=1e-4):
            failures.append(f"case3/{r}")

    if failures:
        print("MISMATCH:", failures)
    else:
        print("KERNEL_OK")
</pallas_src>

<mosaic_0001>
module attributes {stable_mosaic.version = 11 : i64} {
  func.func @_pool_kernel(%arg0: i32, %arg1: i32, %arg2: memref<1x8xi32, #tpu.memory_space<vmem>>, %arg3: memref<8x32xf32, #tpu.memory_space<vmem>>, %arg4: memref<8x32xf32, #tpu.memory_space<vmem>>, %arg5: memref<8x32xf32, #tpu.memory_space<vmem>>, %arg6: memref<8x1xf32, #tpu.memory_space<vmem>>) attributes {dimension_semantics = [#tpu.dimension_semantics<parallel>, #tpu.dimension_semantics<arbitrary>], iteration_bounds = array<i64: 1, 1>, scalar_prefetch = 0 : i64, scratch_operands = 2 : i64, tpu.core_type = #tpu.core_type<tc>, window_params = [{transform_indices = @transform_0, window_bounds = array<i64: 1, 8>}, {transform_indices = @transform_1, window_bounds = array<i64: 8, 32>}, {transform_indices = @transform_2, window_bounds = array<i64: 8, 32>}]} {
    %c0_i32 = arith.constant 0 : i32
    %0 = arith.cmpi eq, %arg1, %c0_i32 : i32
    %1 = arith.extui %0 : i1 to i32
    %c0_i32_0 = arith.constant 0 : i32
    %2 = arith.cmpi ne, %1, %c0_i32_0 : i32
    scf.if %2 {
      %cst_15 = arith.constant 0.000000e+00 : f32
      %24 = vector.broadcast %cst_15 : f32 to vector<8x32xf32>
      %c0_16 = arith.constant 0 : index
      %c0_17 = arith.constant 0 : index
      %25 = vector.load %arg5[%c0_16, %c0_17] : memref<8x32xf32, #tpu.memory_space<vmem>>, vector<8x32xf32>
      tpu.vector_store %arg5[%c0_16, %c0_17], %24 {strides = array<i32>} : memref<8x32xf32, #tpu.memory_space<vmem>>, vector<8x32xf32>,
      %cst_18 = arith.constant 0.000000e+00 : f32
      %26 = vector.broadcast %cst_18 : f32 to vector<8x1xf32>
      %c0_19 = arith.constant 0 : index
      %c0_20 = arith.constant 0 : index
      %27 = vector.load %arg6[%c0_19, %c0_20] : memref<8x1xf32, #tpu.memory_space<vmem>>, vector<8x1xf32>
      tpu.vector_store %arg6[%c0_19, %c0_20], %26 {strides = array<i32>} : memref<8x1xf32, #tpu.memory_space<vmem>>, vector<8x1xf32>,
    } else {
    }
    %c0 = arith.constant 0 : index
    %c0_1 = arith.constant 0 : index
    %3 = vector.load %arg3[%c0, %c0_1] : memref<8x32xf32, #tpu.memory_space<vmem>>, vector<8x32xf32>
    %c0_2 = arith.constant 0 : index
    %c0_3 = arith.constant 0 : index
    %4 = vector.load %arg2[%c0_2, %c0_3] : memref<1x8xi32, #tpu.memory_space<vmem>>, vector<1x8xi32>
    %5 = tpu.iota {dimensions = array<i32: 0>} : vector<8x8xi32>
    %6 = vector.broadcast %4 : vector<1x8xi32> to vector<8x8xi32>
    %7 = arith.cmpi eq, %5, %6 : vector<8x8xi32>
    %8 = arith.extui %7 : vector<8x8xi1> to vector<8x8xi32>
    %9 = arith.sitofp %8 : vector<8x8xi32> to vector<8x8xf32>
    %c0_4 = arith.constant 0 : index
    %c0_5 = arith.constant 0 : index
    %10 = vector.load %arg5[%c0_4, %c0_5] : memref<8x32xf32, #tpu.memory_space<vmem>>, vector<8x32xf32>
    %cst = arith.constant dense<0.000000e+00> : vector<8x32xf32>
    %11 = tpu.matmul %9, %3, %cst {dimension_numbers = #tpu.dot_dimension_numbers<[1], [0], [0], [1], [0, 0, 1, 1], [], []>} : vector<8x8xf32>, vector<8x32xf32>, vector<8x32xf32> -> vector<8x32xf32>
    %12 = arith.addf %10, %11 : vector<8x32xf32>
    %c0_6 = arith.constant 0 : index
    %c0_7 = arith.constant 0 : index
    %13 = vector.load %arg5[%c0_6, %c0_7] : memref<8x32xf32, #tpu.memory_space<vmem>>, vector<8x32xf32>
    tpu.vector_store %arg5[%c0_6, %c0_7], %12 {strides = array<i32>} : memref<8x32xf32, #tpu.memory_space<vmem>>, vector<8x32xf32>,
    %c0_8 = arith.constant 0 : index
    %c0_9 = arith.constant 0 : index
    %14 = vector.load %arg6[%c0_8, %c0_9] : memref<8x1xf32, #tpu.memory_space<vmem>>, vector<8x1xf32>
    %15 = arith.extui %7 : vector<8x8xi1> to vector<8x8xi32>
    %16 = arith.sitofp %15 : vector<8x8xi32> to vector<8x8xf32>
    %cst_10 = arith.constant dense<0.000000e+00> : vector<8xf32>
    %17 = vector.multi_reduction <add>, %16, %cst_10 [1] : vector<8x8xf32> to vector<8xf32>
    %18 = vector.shape_cast %17 : vector<8xf32> to vector<8x1xf32>
    %19 = arith.addf %14, %18 : vector<8x1xf32>
    %c0_11 = arith.constant 0 : index
    %c0_12 = arith.constant 0 : index
    %20 = vector.load %arg6[%c0_11, %c0_12] : memref<8x1xf32, #tpu.memory_space<vmem>>, vector<8x1xf32>
    tpu.vector_store %arg6[%c0_11, %c0_12], %19 {strides = array<i32>} : memref<8x1xf32, #tpu.memory_space<vmem>>, vector<8x1xf32>,
    %c0_i32_13 = arith.constant 0 : i32
    %21 = arith.cmpi eq, %arg1, %c0_i32_13 : i32
    %22 = arith.extui %21 : i1 to i32
    %c0_i32_14 = arith.constant 0 : i32
    %23 = arith.cmpi ne, %22, %c0_i32_14 : i32
    scf.if %23 {
      %c0_15 = arith.constant 0 : index
      %c0_16 = arith.constant 0 : index
      %24 = vector.load %arg5[%c0_15, %c0_16] : memref<8x32xf32, #tpu.memory_space<vmem>>, vector<8x32xf32>
      %c0_17 = arith.constant 0 : index
      %c0_18 = arith.constant 0 : index
      %25 = vector.load %arg6[%c0_17, %c0_18] : memref<8x1xf32, #tpu.memory_space<vmem>>, vector<8x1xf32>
      %cst_19 = arith.constant 1.000000e+00 : f32
      %26 = vector.broadcast %cst_19 : f32 to vector<8x1xf32>
      %27 = arith.maximumf %25, %26 : vector<8x1xf32>
      %28 = vector.broadcast %27 : vector<8x1xf32> to vector<8x32xf32>
      %29 = arith.divf %24, %28 : vector<8x32xf32>
      %c0_20 = arith.constant 0 : index
      %c0_21 = arith.constant 0 : index
      %30 = vector.load %arg4[%c0_20, %c0_21] : memref<8x32xf32, #tpu.memory_space<vmem>>, vector<8x32xf32>
      tpu.vector_store %arg4[%c0_20, %c0_21], %29 {strides = array<i32>} : memref<8x32xf32, #tpu.memory_space<vmem>>, vector<8x32xf32>,
    } else {
    }
    return
  }
  func.func @transform_0(%arg0: i32, %arg1: i32) -> (i32, i32) {
    %c0_i32 = arith.constant 0 : i32
    %c0_i32_0 = arith.constant 0 : i32
    return %c0_i32, %arg1 : i32, i32
  }
  func.func @transform_1(%arg0: i32, %arg1: i32) -> (i32, i32) {
    %c0_i32 = arith.constant 0 : i32
    return %arg1, %arg0 : i32, i32
  }
  func.func @transform_2(%arg0: i32, %arg1: i32) -> (i32, i32) {
    %c0_i32 = arith.constant 0 : i32
    %c0_i32_0 = arith.constant 0 : i32
    return %c0_i32, %arg0 : i32, i32
  }
}

</mosaic_0001>

<bundles_post_ra>
// kernel: tpu_custom_call.1
= control target key start
LH: loop header
LB: loop body
LE: loop exit
PB: predicated region body
PF: predicated region fallthrough
CT: control target
= control target key end

     0   :  { %7 = vsyncpa [#allocation5], 0  ;;  %s290_s0 = inlined_call_operand.hbm [shape: s32[1,8], index: 0, kind: input, shape index: {}]   ;;  %s291_s1 = inlined_call_operand.hbm [shape: f32[8,32], index: 1, kind: input, shape index: {}]   ;;  %s292_s2 = inlined_call_operand.hbm [shape: f32[8,32], index: 2, kind: output, shape index: {}]  }
   0x1   :  { %8 = vsyncpa [#allocation8], 0 }
   0x2   :  { %9 = vsyncpa [#allocation6], 0  ;;  %s255_s9 = smov [#allocation4]   ;;  %s256_s11 = smov [#allocation7]  }
   0x3   :  { %s16_s10 = sshll.u32 %s255_s9, 4  ;;  %s26_s12 = sshll.u32 %s256_s11, 4  ;;  %s17_s10 = int_to_ptr.vmem [resolvable:$true] %s16_s10  ;;  %s27_s12 = int_to_ptr.vmem [resolvable:$true] %s26_s12 }
   0x4   :  { %s197_s13 = scalar_lea.vmem %s17_s10, 16  ;;  %s201_s14 = scalar_lea.vmem %s17_s10, 32 }
   0x5   :  { %p198_p0 = scmp.ne.s32.totalorder %s17_s10, %s197_s13  ;;  %p202_p1 = scmp.lt.s32.totalorder %s17_s10, %s17_s10 }
   0x6   :  { %p203_p2 = scmp.lt.s32.totalorder %s201_s14, %s197_s13 }
   0x8   :  { %p204_p3 = por %p203_p2, %p202_p1 }
   0xa   :  { %p205_p4 = pnand %p204_p3, %p198_p0 }
   0xc   :  { %208 = shalt.err (!%p205_p4)
}
   0xd   :  { %19 = dma.hbm_to_vmem [thread:$0]  %s290_s0, 16, %s17_s10, [#allocation5]  }
   0xe   :  { %s217_s17 = scalar_lea.vmem %s27_s12, 128  ;;  %p222_p6 = scmp.lt.s32.totalorder %s27_s12, %s27_s12 }
   0xf   :  { %p218_p5 = scmp.ne.s32.totalorder %s27_s12, %s217_s17  ;;  %p223_p7 = scmp.lt.s32.totalorder %s217_s17, %s217_s17 }
  0x11   :  { %p224_p8 = por %p223_p7, %p222_p6 }
  0x13   :  { %p225_p9 = pnand %p224_p8, %p218_p5 }
  0x15   :  { %228 = shalt.err (!%p225_p9)
}
  0x16   :  { %29 = dma.hbm_to_vmem [thread:$0]  %s291_s1, 128, %s27_s12, [#allocation8]  }
  0x17   :  { %249 = dma.done.wait [#allocation5], 16  }
  0x18   :  { %250 = vsyncadd [#allocation5], 4294967280 }
  0x19   :  { %251 = dma.done.wait [#allocation8], 128  }
  0x1a   :  { %252 = vsyncadd [#allocation8], 4294967168  ;;  %vm42_vm0 = vcmask 7168   ;;  %v46_v0 = vlaneseq  ;;  %v257_v1 = vmov 0.0   ;;  %vm258_vm1 = vmmov 0   ;;  %v44_v4 = vld [vmem:[#allocation7] sm:$0xff] }
  0x1b   :  { %43 = vst.msk [vmem:[#allocation3] sm:$0xff] %vm42_vm0, %v257_v1  ;;  %175 = vmatprep.subr.mxu0 %v257_v1  ;;  %177 = vmatprep.mubr.msk.f32.mxu0 %vm258_vm1, %v257_v1  ;;  %v170_v3 = vld [vmem:[#allocation4] ss:$0 sm:$0xff]  ;;  %vm56_vm2 = vcmask 64512   ;;  %v259_v7 = vmov 0   ;;  %vm40_vm4 = vcmask 261120  }
  0x1c   :  { %v47_v2 = vshrl.u32 %v46_v0, 7  ;;  %176 = vmatpush3.msra.mxu0 %v44_v4  ;;  %186 = vset.pattern.permute.xlu0 %v259_v7  ;;  %41 = vst.msk [vmem:[#allocation2] sm:$0xff] %vm40_vm4, %v257_v1  ;;  %s260_s0 = smov [#allocation9]  }
  0x1d   :  { %s160_s1 = sshll.u32 %s260_s0, 4  ;;  %s161_s1 = int_to_ptr.vmem [resolvable:$true] %s160_s1 }
  0x1e   :  { %vm52_vm3 = vcmp.eq.s32.totalorder %v47_v2, %v170_v3  ;;  %s229_s20 = scalar_lea.vmem %s161_s1, 128  ;;  %p234_p11 = scmp.lt.s32.totalorder %s161_s1, %s161_s1 }
  0x1f   :  { %v171_v5 = vsel %vm52_vm3, 1.0, %v257_v1  ;;  %p230_p10 = scmp.ne.s32.totalorder %s161_s1, %s229_s20  ;;  %p235_p12 = scmp.lt.s32.totalorder %s229_s20, %s229_s20 }
  0x20   :  { %v134_v6 = vsel %vm56_vm2, %v171_v5, 0.0  ;;  %178 = vmatmul.mubr.msk.f32.vlgmr.msra.gmra.mxu0 %vm56_vm2, %v171_v5 }
  0x21   :  { %135 = vadd.xlane.f32.xlu0 %v134_v6  ;;  %p236_p13 = por %p235_p12, %p234_p11 }
  0x22   :  { %v133_v8 = vld [vmem:[#allocation3] sm:$0xff] }
  0x23   :  { %v55_v13 = vld [vmem:[#allocation2] sm:$0xff]  ;;  %p237_p0 = pnand %p236_p13, %p230_p10 }
  0xaa   :  { %v136_v9 = vpop.xlane.xlu0 %135 }
  0xab   :  { %v137_v10 = vadd.f32 %v136_v9, %v133_v8 }
  0xad   :  { %139 = vst.msk [vmem:[#allocation3] sm:$0xff] %vm42_vm0, %v137_v10 }
  0xb4   :  { %v144_v11 = vld [vmem:[#allocation3] sm:$0xff] }
  0xb5   :  { %v145_v12 = vmax.f32 %v144_v11, 1.0 }
  0xb7   :  { %148 = vperm.xlu0 %186, %v145_v12  }
  0xe0   :  { %v126_v14 = vpop.f32.mrf.mxu0 }
  0xe1   :  { %v130_v15 = vadd.f32 %v126_v14, %v55_v13 }
  0xe2   :  { %v179_v16 = vpop.f32.mrf.mxu0 }
  0xe3   :  { %132 = vst.msk [vmem:[#allocation2] sm:$0xff] %vm40_vm4, %v130_v15 }
  0xea   :  { %v143_v18 = vld [vmem:[#allocation2] sm:$0xff] }
 0x132   :  { %v149_v17 = vpop.permute.xlu0 %148 }
 0x133   :  { %187 = vrcp.f32 %v149_v17 }
 0x140   :  { %v188_v19 = vpop.eup %187 }
 0x141   :  { %v152_v20 = vmul.f32 %v188_v19, %v143_v18 }
 0x143   :  { %153 = vst.msk [vmem:[#allocation9] sm:$0xff] %vm40_vm4, %v152_v20 }
 0x144   :  { %240 = shalt.err (!%p237_p0)
}
 0x145   :  { %163 = dma.vmem_to_hbm [thread:$0]  %s161_s1, 128, %s292_s2, [#allocation6]  }
 0x146   :  { %253 = dma.done.wait [#allocation6], 128  }
 0x147   :  { %254 = vsyncadd [#allocation6], 4294967168 }
 0x148   :  { %167 = vsyncpa [#allocation5], 1 }
 0x149   :  { %168 = vsyncpa [#allocation8], 1 }
 0x14a   :  { %169 = vsyncpa [#allocation6], 1 }

</bundles_post_ra>
